<compile_context>
chip_gen: v5e
topology: v5e:2x2
jax: 0.10.0
libtpu: 0.0.40
codegen_flags: <defaults>
</compile_context>

<pallas_src>
import math

import jax
import jax.numpy as jnp
from jax.experimental import pallas as pl
from jax.experimental.pallas import tpu as pltpu

_LANE = 128


def _round_up(x, m):
    return (x + m - 1) // m * m


def policy_mu_kernel(state_ref, w1_ref, b1_ref, w2_ref, b2_ref,
                     w3_ref, b3_ref, mu_ref):
    """mu = tanh(relu(relu(x@W1+b1)@W2+b2)@W3+b3) on one batch tile.

    Matmul inputs are bf16 (MXU), accumulation + bias add + relu + tanh are
    f32 (v5e-safe), and the store to mu is bf16 (halves writeback bandwidth).
    """
    cdt = w1_ref.dtype  # matmul input dtype (bf16)

    x = state_ref[...].astype(cdt)
    h = jnp.dot(x, w1_ref[...], preferred_element_type=jnp.float32) + b1_ref[...]
    h = jnp.maximum(h, 0.0)
    h = jnp.dot(h.astype(cdt), w2_ref[...], preferred_element_type=jnp.float32) + b2_ref[...]
    h = jnp.maximum(h, 0.0)
    h = jnp.dot(h.astype(cdt), w3_ref[...], preferred_element_type=jnp.float32) + b3_ref[...]
    mu_ref[...] = jnp.tanh(h).astype(mu_ref.dtype)


def prepare_params(params, *, compute_dtype=jnp.bfloat16):
    """One-time parameter prep (do NOT call per forward step).

    Casts weights to the MXU dtype and zero-pads the last layer to a
    multiple of 128 output columns (lane-dense, unmasked vector stores).
    Biases stay f32 (elementwise path is f32 in the kernel).
    """
    action_dim = params["w3"].shape[1]
    a_pad = _round_up(action_dim, _LANE)
    return {
        "w1": params["w1"].astype(compute_dtype),
        "b1": params["b1"].astype(jnp.float32),
        "w2": params["w2"].astype(compute_dtype),
        "b2": params["b2"].astype(jnp.float32),
        "w3": jnp.pad(params["w3"],
                      ((0, 0), (0, a_pad - action_dim))).astype(compute_dtype),
        "b3": jnp.pad(params["b3"],
                      ((0, 0), (0, a_pad - action_dim))).astype(jnp.float32),
    }


def policy_net_forward(state, episode, prepped, action_bounds, *,
                       action_dim, block_batch=2048):
    """PolicyNet.forward. Returns (mu, sigma).

    state:         (B, stateDim) float32
    episode:       scalar (python number or traced jnp scalar)
    prepped:       output of prepare_params()  (bf16 weights, padded w3/b3)
    action_bounds: (actionDim, 2) float32, per-action [low, high]
    action_dim:    static int (number of real output columns)
    """
    B, state_dim = state.shape
    hidden = prepped["w1"].shape[1]
    a_pad = prepped["w3"].shape[1]

    # --- sigma branch: state-independent, plain JAX (hoisted out of kernel) ---
    episode = jnp.asarray(episode, jnp.float32)
    sigma = jnp.exp(-episode / 500.0) * jnp.max(action_bounds, axis=1)

    # --- batch tiling: big sublane-aligned tile (amortizes ~0.35us/step) ---
    tb = min(block_batch, _round_up(B, 8))
    b_pad = _round_up(B, tb)
    # v7x megacore: keep grid length >= 2 when the tile is still large after
    # halving, so the "parallel" batch axis can shard across both TCs.
    if b_pad // tb < 2 and tb >= 512:
        tb = _round_up(tb // 2, 8)
        b_pad = _round_up(B, tb)
    if b_pad != B:
        state = jnp.pad(state, ((0, b_pad - B), (0, 0)))

    def resident(arr):  # whole array, constant block index -> stays in VMEM
        nd = arr.ndim
        return pl.BlockSpec(arr.shape, lambda i, _nd=nd: (0,) * _nd)

    weight_bytes = sum(prepped[k].size * prepped[k].dtype.itemsize
                       for k in ("w1", "b1", "w2", "b2", "w3", "b3"))
    cost = pl.CostEstimate(
        flops=2 * b_pad * (state_dim * hidden + hidden * hidden + hidden * a_pad),
        transcendentals=b_pad * a_pad,
        bytes_accessed=(state.size * state.dtype.itemsize   # state read (f32)
                        + b_pad * a_pad * 2                  # mu write (bf16)
                        + weight_bytes),
    )

    mu = pl.pallas_call(
        policy_mu_kernel,
        out_shape=jax.ShapeDtypeStruct((b_pad, a_pad), jnp.bfloat16),
        grid=(b_pad // tb,),
        in_specs=[
            pl.BlockSpec((tb, state_dim), lambda i: (i, 0)),  # batch-tiled state
            resident(prepped["w1"]), resident(prepped["b1"]),
            resident(prepped["w2"]), resident(prepped["b2"]),
            resident(prepped["w3"]), resident(prepped["b3"]),
        ],
        out_specs=pl.BlockSpec((tb, a_pad), lambda i: (i, 0)),  # lane-dense slab
        compiler_params=pltpu.CompilerParams(
            dimension_semantics=("parallel",)),  # megacore sharding on v7x
        cost_estimate=cost,
    )(state, prepped["w1"], prepped["b1"], prepped["w2"], prepped["b2"],
      prepped["w3"], prepped["b3"])

    # NOTE: this slice is a second HBM pass over the padded mu slab; consumers
    # that can accept the padded bf16 slab should take `mu` directly and slice
    # at the point of use so XLA fuses it into the next op.
    return mu[:B, :action_dim], sigma


def init_params(key, state_dim, action_dim, hidden=64):
    """Deterministic synthetic init (uniform fan-in, like torch Linear default).

    Weights are stored (in_features, out_features) so the kernel computes
    x @ W + b (== torch's x @ W.T + b with the transposed parameter).
    """
    keys = jax.random.split(key, 6)

    def linear(kw, kb, fan_in, fan_out):
        bound = 1.0 / math.sqrt(fan_in)
        w = jax.random.uniform(kw, (fan_in, fan_out), jnp.float32, -bound, bound)
        b = jax.random.uniform(kb, (1, fan_out), jnp.float32, -bound, bound)
        return w, b

    w1, b1 = linear(keys[0], keys[1], state_dim, hidden)
    w2, b2 = linear(keys[2], keys[3], hidden, hidden)
    w3, b3 = linear(keys[4], keys[5], hidden, action_dim)
    return {"w1": w1, "b1": b1, "w2": w2, "b2": b2, "w3": w3, "b3": b3}


if __name__ == "__main__":
    key = jax.random.PRNGKey(0)
    k_state, k_params, k_bounds = jax.random.split(key, 3)

    batch = 8
    state_dim = 32
    action_dim = 8

    state = jax.random.normal(k_state, (batch, state_dim), dtype=jnp.float32)
    params = init_params(k_params, state_dim, action_dim)
    prepped = prepare_params(params)          # one-time bf16 cast + 128-col pad
    # actionBounds: (actionDim, 2) — per-action [low, high]
    highs = jax.random.uniform(k_bounds, (action_dim, 1), jnp.float32, 0.5, 2.0)
    action_bounds = jnp.concatenate([-highs, highs], axis=1)
    episode = jnp.float32(100.0)              # traced scalar -> no recompiles

    fwd = jax.jit(policy_net_forward,
                  static_argnames=("action_dim", "block_batch"))
    mu, sigma = fwd(state, episode, prepped, action_bounds,
                    action_dim=action_dim)
    jax.block_until_ready((mu, sigma))

    # --- plain-JAX reference with identical dtype handling (bf16 MXU inputs,
    #     f32 accumulation / elementwise) ---
    def ref_mu(x, p):
        cdt = jnp.bfloat16
        h = jnp.maximum(
            jnp.dot(x.astype(cdt), p["w1"].astype(cdt),
                    preferred_element_type=jnp.float32) + p["b1"], 0.0)
        h = jnp.maximum(
            jnp.dot(h.astype(cdt), p["w2"].astype(cdt),
                    preferred_element_type=jnp.float32) + p["b2"], 0.0)
        return jnp.tanh(
            jnp.dot(h.astype(cdt), p["w3"].astype(cdt),
                    preferred_element_type=jnp.float32) + p["b3"])

    mu_ref = ref_mu(state, params)
    sigma_ref = math.exp(-100.0 / 500.0) * jnp.max(action_bounds, axis=1)

    assert mu.shape == (batch, action_dim), f"bad mu shape {mu.shape}"
    assert sigma.shape == (action_dim,), f"bad sigma shape {sigma.shape}"
    assert mu.dtype == jnp.bfloat16, f"bad mu dtype {mu.dtype}"
    # mu is stored in bf16 -> ~3 decimal digits of precision on [-1, 1]
    assert jnp.allclose(mu.astype(jnp.float32), mu_ref, atol=1e-2, rtol=1e-2), "mu mismatch"
    assert jnp.allclose(sigma, sigma_ref, atol=1e-5), "sigma mismatch"

    print("KERNEL_OK")
</pallas_src>

<mosaic_0001>
module attributes {stable_mosaic.version = 11 : i64} {
  func.func @policy_mu_kernel(%arg0: i32, %arg1: memref<8x32xf32, #tpu.memory_space<vmem>>, %arg2: memref<32x64xbf16, #tpu.memory_space<vmem>>, %arg3: memref<1x64xf32, #tpu.memory_space<vmem>>, %arg4: memref<64x64xbf16, #tpu.memory_space<vmem>>, %arg5: memref<1x64xf32, #tpu.memory_space<vmem>>, %arg6: memref<64x128xbf16, #tpu.memory_space<vmem>>, %arg7: memref<1x128xf32, #tpu.memory_space<vmem>>, %arg8: memref<8x128xbf16, #tpu.memory_space<vmem>>) attributes {dimension_semantics = [#tpu.dimension_semantics<parallel>], iteration_bounds = array<i64: 1>, scalar_prefetch = 0 : i64, scratch_operands = 0 : i64, tpu.core_type = #tpu.core_type<tc>, window_params = [{transform_indices = @transform_0, window_bounds = array<i64: 8, 32>}, {pipeline_mode = #tpu.pipeline_mode<synchronous>, transform_indices = @transform_1, window_bounds = array<i64: 32, 64>}, {pipeline_mode = #tpu.pipeline_mode<synchronous>, transform_indices = @transform_2, window_bounds = array<i64: 1, 64>}, {pipeline_mode = #tpu.pipeline_mode<synchronous>, transform_indices = @transform_3, window_bounds = array<i64: 64, 64>}, {pipeline_mode = #tpu.pipeline_mode<synchronous>, transform_indices = @transform_4, window_bounds = array<i64: 1, 64>}, {pipeline_mode = #tpu.pipeline_mode<synchronous>, transform_indices = @transform_5, window_bounds = array<i64: 64, 128>}, {pipeline_mode = #tpu.pipeline_mode<synchronous>, transform_indices = @transform_6, window_bounds = array<i64: 1, 128>}, {transform_indices = @transform_7, window_bounds = array<i64: 8, 128>}]} {
    %c0 = arith.constant 0 : index
    %c0_0 = arith.constant 0 : index
    %0 = vector.load %arg1[%c0, %c0_0] : memref<8x32xf32, #tpu.memory_space<vmem>>, vector<8x32xf32>
    %1 = arith.truncf %0 : vector<8x32xf32> to vector<8x32xbf16>
    %c0_1 = arith.constant 0 : index
    %c0_2 = arith.constant 0 : index
    %2 = vector.load %arg2[%c0_1, %c0_2] : memref<32x64xbf16, #tpu.memory_space<vmem>>, vector<32x64xbf16>
    %cst = arith.constant dense<0.000000e+00> : vector<8x64xf32>
    %3 = tpu.matmul %1, %2, %cst {dimension_numbers = #tpu.dot_dimension_numbers<[1], [0], [0], [1], [0, 0, 1, 1], [], []>} : vector<8x32xbf16>, vector<32x64xbf16>, vector<8x64xf32> -> vector<8x64xf32>
    %c0_3 = arith.constant 0 : index
    %c0_4 = arith.constant 0 : index
    %4 = vector.load %arg3[%c0_3, %c0_4] : memref<1x64xf32, #tpu.memory_space<vmem>>, vector<1x64xf32>
    %5 = vector.broadcast %4 : vector<1x64xf32> to vector<8x64xf32>
    %6 = arith.addf %3, %5 : vector<8x64xf32>
    %cst_5 = arith.constant 0.000000e+00 : f32
    %7 = vector.broadcast %cst_5 : f32 to vector<8x64xf32>
    %8 = arith.maximumf %6, %7 : vector<8x64xf32>
    %9 = arith.truncf %8 : vector<8x64xf32> to vector<8x64xbf16>
    %c0_6 = arith.constant 0 : index
    %c0_7 = arith.constant 0 : index
    %10 = vector.load %arg4[%c0_6, %c0_7] : memref<64x64xbf16, #tpu.memory_space<vmem>>, vector<64x64xbf16>
    %cst_8 = arith.constant dense<0.000000e+00> : vector<8x64xf32>
    %11 = tpu.matmul %9, %10, %cst_8 {dimension_numbers = #tpu.dot_dimension_numbers<[1], [0], [0], [1], [0, 0, 1, 1], [], []>} : vector<8x64xbf16>, vector<64x64xbf16>, vector<8x64xf32> -> vector<8x64xf32>
    %c0_9 = arith.constant 0 : index
    %c0_10 = arith.constant 0 : index
    %12 = vector.load %arg5[%c0_9, %c0_10] : memref<1x64xf32, #tpu.memory_space<vmem>>, vector<1x64xf32>
    %13 = vector.broadcast %12 : vector<1x64xf32> to vector<8x64xf32>
    %14 = arith.addf %11, %13 : vector<8x64xf32>
    %cst_11 = arith.constant 0.000000e+00 : f32
    %15 = vector.broadcast %cst_11 : f32 to vector<8x64xf32>
    %16 = arith.maximumf %14, %15 : vector<8x64xf32>
    %17 = arith.truncf %16 : vector<8x64xf32> to vector<8x64xbf16>
    %c0_12 = arith.constant 0 : index
    %c0_13 = arith.constant 0 : index
    %18 = vector.load %arg6[%c0_12, %c0_13] : memref<64x128xbf16, #tpu.memory_space<vmem>>, vector<64x128xbf16>
    %cst_14 = arith.constant dense<0.000000e+00> : vector<8x128xf32>
    %19 = tpu.matmul %17, %18, %cst_14 {dimension_numbers = #tpu.dot_dimension_numbers<[1], [0], [0], [1], [0, 0, 1, 1], [], []>} : vector<8x64xbf16>, vector<64x128xbf16>, vector<8x128xf32> -> vector<8x128xf32>
    %c0_15 = arith.constant 0 : index
    %c0_16 = arith.constant 0 : index
    %20 = vector.load %arg7[%c0_15, %c0_16] : memref<1x128xf32, #tpu.memory_space<vmem>>, vector<1x128xf32>
    %21 = vector.broadcast %20 : vector<1x128xf32> to vector<8x128xf32>
    %22 = arith.addf %19, %21 : vector<8x128xf32>
    %23 = math.tanh %22 : vector<8x128xf32>
    %24 = arith.truncf %23 : vector<8x128xf32> to vector<8x128xbf16>
    %c0_17 = arith.constant 0 : index
    %c0_18 = arith.constant 0 : index
    %25 = vector.load %arg8[%c0_17, %c0_18] : memref<8x128xbf16, #tpu.memory_space<vmem>>, vector<8x128xbf16>
    tpu.vector_store %arg8[%c0_17, %c0_18], %24 {strides = array<i32>} : memref<8x128xbf16, #tpu.memory_space<vmem>>, vector<8x128xbf16>,
    return
  }
  func.func @transform_0(%arg0: i32) -> (i32, i32) {
    %c0_i32 = arith.constant 0 : i32
    %c0_i32_0 = arith.constant 0 : i32
    return %arg0, %c0_i32 : i32, i32
  }
  func.func @transform_1(%arg0: i32) -> (i32, i32) {
    %c0_i32 = arith.constant 0 : i32
    %c0_i32_0 = arith.constant 0 : i32
    %c0_i32_1 = arith.constant 0 : i32
    return %c0_i32, %c0_i32_0 : i32, i32
  }
  func.func @transform_2(%arg0: i32) -> (i32, i32) {
    %c0_i32 = arith.constant 0 : i32
    %c0_i32_0 = arith.constant 0 : i32
    %c0_i32_1 = arith.constant 0 : i32
    return %c0_i32, %c0_i32_0 : i32, i32
  }
  func.func @transform_3(%arg0: i32) -> (i32, i32) {
    %c0_i32 = arith.constant 0 : i32
    %c0_i32_0 = arith.constant 0 : i32
    %c0_i32_1 = arith.constant 0 : i32
    return %c0_i32, %c0_i32_0 : i32, i32
  }
  func.func @transform_4(%arg0: i32) -> (i32, i32) {
    %c0_i32 = arith.constant 0 : i32
    %c0_i32_0 = arith.constant 0 : i32
    %c0_i32_1 = arith.constant 0 : i32
    return %c0_i32, %c0_i32_0 : i32, i32
  }
  func.func @transform_5(%arg0: i32) -> (i32, i32) {
    %c0_i32 = arith.constant 0 : i32
    %c0_i32_0 = arith.constant 0 : i32
    %c0_i32_1 = arith.constant 0 : i32
    return %c0_i32, %c0_i32_0 : i32, i32
  }
  func.func @transform_6(%arg0: i32) -> (i32, i32) {
    %c0_i32 = arith.constant 0 : i32
    %c0_i32_0 = arith.constant 0 : i32
    %c0_i32_1 = arith.constant 0 : i32
    return %c0_i32, %c0_i32_0 : i32, i32
  }
  func.func @transform_7(%arg0: i32) -> (i32, i32) {
    %c0_i32 = arith.constant 0 : i32
    %c0_i32_0 = arith.constant 0 : i32
    return %arg0, %c0_i32 : i32, i32
  }
}

</mosaic_0001>

<bundles_post_ra>
// kernel: policy_net_forward.1
= control target key start
LH: loop header
LB: loop body
LE: loop exit
PB: predicated region body
PF: predicated region fallthrough
CT: control target
= control target key end

     0   :  { %12 = vsyncpa [#allocation3], 0  ;;  %s524_s0 = inlined_call_operand.hbm [shape: f32[8,32], index: 0, kind: input, shape index: {}]   ;;  %s525_s1 = inlined_call_operand.vmem [shape: bf16[32,64], index: 1, kind: input, shape index: {}]   ;;  %s526_s2 = inlined_call_operand.vmem [shape: f32[1,64], index: 2, kind: input, shape index: {}]   ;;  %s527_s3 = inlined_call_operand.hbm [shape: bf16[64,64], index: 3, kind: input, shape index: {}]   ;;  %s528_s4 = inlined_call_operand.vmem [shape: f32[1,64], index: 4, kind: input, shape index: {}]   ;;  %s529_s5 = inlined_call_operand.hbm [shape: bf16[64,128], index: 5, kind: input, shape index: {}]   ;;  %s530_s6 = inlined_call_operand.hbm [shape: f32[1,128], index: 6, kind: input, shape index: {}]   ;;  %s531_s7 = inlined_call_operand.hbm [shape: bf16[8,128], index: 7, kind: output, shape index: {}]  }
   0x1   :  { %13 = vsyncpa [#allocation6], 0 }
   0x2   :  { %14 = vsyncpa [#allocation9], 0  ;;  %s35_s26 = sshll.u32 %s527_s3, 4  ;;  %s36_s26 = int_to_ptr.hbm [resolvable:$true] %s35_s26 }
   0x3   :  { %15 = vsyncpa [#allocation4], 0  ;;  %s450_s27 = smov [#allocation5]   ;;  %s21_s8 = sshll.u32 %s524_s0, 4  ;;  %s22_s8 = int_to_ptr.hbm [resolvable:$true] %s21_s8 }
   0x4   :  { %s37_s28 = sshll.u32 %s450_s27, 4  ;;  %s451_s9 = smov 64   ;;  %s38_s28 = int_to_ptr.vmem [resolvable:$true] %s37_s28 }
   0x5   :  { %s452_s10 = smov 4   ;;  %s453_s11 = smov [#allocation2]  }
   0x6   :  { %43 = dma.hbm_to_vmem [thread:$0]  %s36_s26, 512, %s38_s28, [#allocation6], %s451_s9, %s451_s9, %s452_s10  }
   0x7   :  { %s23_s12 = sshll.u32 %s453_s11, 4  ;;  %s50_s15 = sshll.u32 %s529_s5, 4  ;;  %s24_s12 = int_to_ptr.vmem [resolvable:$true] %s23_s12  ;;  %s51_s15 = int_to_ptr.hbm [resolvable:$true] %s50_s15 }
   0x8   :  { %26 = dma.hbm_to_vmem [thread:$0]  %s22_s8, 128, %s24_s12, [#allocation3]  }
   0x9   :  { %s64_s17 = sshll.u32 %s530_s6, 4  ;;  %s454_s18 = smov [#allocation7]   ;;  %s65_s17 = int_to_ptr.hbm [resolvable:$true] %s64_s17 }
   0xa   :  { %s52_s19 = sshll.u32 %s454_s18, 4  ;;  %s455_s0 = smov [#allocation8]   ;;  %s53_s19 = int_to_ptr.vmem [resolvable:$true] %s52_s19 }
   0xb   :  { %58 = dma.hbm_to_vmem [thread:$0]  %s51_s15, 512, %s53_s19, [#allocation6], %s451_s9, %s451_s9, %s452_s10  }
   0xc   :  { %s66_s20 = sshll.u32 %s455_s0, 4  ;;  %s67_s20 = int_to_ptr.vmem [resolvable:$true] %s66_s20 }
   0xd   :  { %69 = dma.hbm_to_vmem [thread:$0]  %s65_s17, 16, %s67_s20, [#allocation9]  }
   0xe   :  { %442 = dma.done.wait [#allocation3], 128  }
   0xf   :  { %443 = vsyncadd [#allocation3], 4294967168 }
  0x10   :  { %444 = dma.done.wait [#allocation6], 1024  }
  0x11   :  { %445 = vsyncadd [#allocation6], 4294966272 }
  0x12   :  { %446 = dma.done.wait [#allocation9], 16  }
  0x13   :  { %447 = vsyncadd [#allocation9], 4294967280  ;;  %v301_v0 = vld [vmem:[%s525_s1 + $0x8] sm:$0xff]  ;;  %v300_v1 = vld [vmem:[%s525_s1] sm:$0xff]  ;;  %vm109_vm0 = vcmask 261120   ;;  %vm164_vm1 = vcmask 523264  }
  0x14   :  { %v305_v2 = vld [vmem:[#allocation5 + $0x18] sm:$0xff]  ;;  %119 = vmatpush.bf16.msra.mxu0 %v301_v0  ;;  %v304_v4 = vld [vmem:[#allocation5 + $0x10] sm:$0xff]  ;;  %v303_v6 = vld [vmem:[#allocation5 + $0x8] sm:$0xff]  ;;  %s245_s29 = sshll.u32 %s531_s7, 4  ;;  %s246_s29 = int_to_ptr.hbm [resolvable:$true] %s245_s29 }
  0x15   :  { %v87_v3 = vld [vmem:[#allocation2] sm:$0xff]  ;;  %172 = vmatpush.bf16.msra.mxu1 %v305_v2  ;;  %v302_v7 = vld [vmem:[#allocation5] sm:$0xff]  ;;  %v308_v9 = vld [vmem:[#allocation7 + $0x10] sm:$0xff] }
  0x16   :  { %v88_v5 = vpack.c.bf16 %v87_v3, %v87_v3  ;;  %v309_v8 = vld [vmem:[#allocation7 + $0x18] sm:$0xff]  ;;  %v307_v16 = vld [vmem:[#allocation7 + $0x8] sm:$0xff]  ;;  %v306_v17 = vld [vmem:[#allocation7] sm:$0xff] }
  0x17   :  { %226 = vmatpush.bf16.msra.mxu2 %v309_v8  ;;  %v317_v10 = vld [vmem:[%s526_s2] ss:$0 sm:$0xff]  ;;  %v319_v24 = vld [vmem:[#allocation8] ss:$0 sm:$0xff]  ;;  %s456_s2 = smov [#allocation10]  }
  0x18   :  { %120 = vmatpush.bf16.msra.mxu0 %v300_v1  ;;  %v318_v18 = vld [vmem:[%s528_s4] ss:$0 sm:$0xff]  ;;  %s243_s26 = sshll.u32 %s456_s2, 4  ;;  %s244_s26 = int_to_ptr.vmem [resolvable:$true] %s243_s26 }
  0x19   :  { %173 = vmatpush.bf16.msra.mxu1 %v304_v4 }
  0x1b   :  { %265 = vmatmul.msk.bf16.vlgmr.msra.gmra.mxu0 %vm109_vm0, %v88_v5  ;;  %227 = vmatpush.bf16.msra.mxu2 %v308_v9 }
  0x1d   :  { %174 = vmatpush.bf16.msra.mxu1 %v303_v6 }
  0x1f   :  { %228 = vmatpush.bf16.msra.mxu2 %v307_v16 }
  0x21   :  { %175 = vmatpush.bf16.msra.mxu1 %v302_v7 }
  0x23   :  { %229 = vmatpush.bf16.msra.mxu2 %v306_v17 }
  0x98   :  { %v122_v11 = vpop.f32.mrf.mxu0 }
  0x99   :  { %v123_v12 = vadd.f32 %v317_v10, %v122_v11 }
  0x9b   :  { %v126_v13 = vmax.f32 %v123_v12, 0.0 }
  0x9d   :  { %v127_v14 = vpack.c.bf16 %v126_v13, %v126_v13 }
  0x9f   :  { %282 = vmatmul.msk.bf16.vlgmr.msra.gmra.mxu1 %vm164_vm1, %v127_v14 }
  0xa0   :  { %v124_v15 = vpop.f32.mrf.mxu0 }
 0x11c   :  { %v177_v19 = vpop.f32.mrf.mxu1 }
 0x11d   :  { %v178_v20 = vadd.f32 %v318_v18, %v177_v19 }
 0x11f   :  { %v181_v21 = vmax.f32 %v178_v20, 0.0 }
 0x121   :  { %v182_v22 = vpack.c.bf16 %v181_v21, %v181_v21 }
 0x123   :  { %299 = vmatmul.msk.bf16.vlgmr.msra.gmra.mxu2 %vm164_vm1, %v182_v22 }
 0x124   :  { %v179_v23 = vpop.f32.mrf.mxu1 }
 0x1a6   :  { %v231_v25 = vpop.f32.mrf.mxu2 }
 0x1a7   :  { %v232_v26 = vadd.f32 %v319_v24, %v231_v25 }
 0x1a9   :  { %320 = vtanh.f32 %v232_v26 }
 0x1ae   :  { %v233_v27 = vpop.f32.mrf.mxu2 }
 0x1af   :  { %v321_v28 = vpop.eup %320 }
 0x1b0   :  { %v236_v29 = vpack.c.bf16 %v321_v28, %v321_v28 }
 0x1b2   :  { %237 = vst [vmem:[#allocation10] sm:$0xf] %v236_v29 }
 0x1b3   :  { %248 = dma.vmem_to_hbm [thread:$0]  %s244_s26, 64, %s246_s29, [#allocation4]  }
 0x1b4   :  { %448 = dma.done.wait [#allocation4], 64  }
 0x1b5   :  { %449 = vsyncadd [#allocation4], 4294967232 }
 0x1b6   :  { %253 = vsyncpa [#allocation3], 1 }
 0x1b7   :  { %254 = vsyncpa [#allocation6], 1 }
 0x1b8   :  { %255 = vsyncpa [#allocation9], 1 }
 0x1b9   :  { %256 = vsyncpa [#allocation4], 1 }

</bundles_post_ra>
